<compile_context>
chip_gen: v7x
topology: tpu7x:2x2x1
jax: 0.10.0
libtpu: 0.0.40
codegen_flags: <defaults>
</compile_context>

<pallas_src>
import math
import jax
import jax.numpy as jnp
from jax import lax
from jax.experimental import pallas as pl
from jax.experimental.pallas import tpu as pltpu


def _gelu_exact(x):
    # Matches torch.nn.GELU() default (erf-based, exact).
    return 0.5 * x * (1.0 + lax.erf(x / jnp.sqrt(jnp.float32(2.0))))


def _round_up(v, m):
    return ((v + m - 1) // m) * m


def mlp_kernel(x_ref, w1_ref, b1_ref, w2_ref, b2_ref, o_ref, acc_ref):
    k = pl.program_id(1)

    @pl.when(k == 0)
    def _():
        acc_ref[...] = jnp.zeros_like(acc_ref)

    # fc1 chunk: (TM, Cin) @ (Cin, TH) + (1, TH)  -- f32 accumulation on MXU.
    h = jnp.dot(x_ref[...], w1_ref[...], preferred_element_type=jnp.float32)
    h = h + b1_ref[...].astype(jnp.float32)
    # GELU (exact / erf), computed in f32 (EUP path).
    h = _gelu_exact(h)
    # fc2 partial: (TM, TH) @ (TH, Cout) accumulated across hidden chunks.
    acc_ref[...] += jnp.dot(h.astype(w2_ref.dtype), w2_ref[...],
                            preferred_element_type=jnp.float32)

    @pl.when(k == pl.num_programs(1) - 1)
    def _():
        o = acc_ref[...] + b2_ref[...].astype(jnp.float32)
        # Dropout with p=0.0 -> identity.
        o_ref[...] = o.astype(o_ref.dtype)


def mlp_pallas(x, w1, b1, w2, b2, *, block_m=256, block_h=2048,
               vmem_limit_bytes=64 * 1024 * 1024):
    """x: (B, N, Cin). w1: (Cin, H), b1: (H,), w2: (H, Cout), b2: (Cout,)."""
    B, N, Cin = x.shape
    H = w1.shape[1]
    Cout = w2.shape[1]
    M = B * N

    # Lane-dense channel dims (multiples of 128).
    Cin_p = _round_up(Cin, 128)
    Cout_p = _round_up(Cout, 128)

    # Hidden-dim chunk: multiple of 128; pad H so it divides evenly.
    th = min(_round_up(block_h, 128), _round_up(H, 128))
    H_p = _round_up(H, th)

    # Row tile: multiple of 8 sublanes; pad M so there is no ragged tail tile.
    tm = min(block_m, _round_up(M, 8))
    M_p = _round_up(M, tm)

    x2d = jnp.pad(x.reshape(M, Cin), ((0, M_p - M), (0, Cin_p - Cin)))
    w1_p = jnp.pad(w1, ((0, Cin_p - Cin), (0, H_p - H)))
    b1_p = jnp.pad(b1, (0, H_p - H)).reshape(1, H_p)
    w2_p = jnp.pad(w2, ((0, H_p - H), (0, Cout_p - Cout)))
    b2_p = jnp.pad(b2, (0, Cout_p - Cout)).reshape(1, Cout_p)

    grid = (M_p // tm, H_p // th)

    out2d = pl.pallas_call(
        mlp_kernel,
        out_shape=jax.ShapeDtypeStruct((M_p, Cout_p), x.dtype),
        grid_spec=pltpu.PrefetchScalarGridSpec(
            num_scalar_prefetch=0,
            grid=grid,
            in_specs=[
                # x: tiled over rows, resident across the hidden reduction.
                pl.BlockSpec((tm, Cin_p), lambda i, k: (i, 0)),
                # fc1 weight / bias: one hidden chunk per reduction step.
                pl.BlockSpec((Cin_p, th), lambda i, k: (0, k)),
                pl.BlockSpec((1, th), lambda i, k: (0, k)),
                # fc2 weight chunk (rows matching the hidden chunk).
                pl.BlockSpec((th, Cout_p), lambda i, k: (k, 0)),
                # fc2 bias: constant block -> resident in VMEM.
                pl.BlockSpec((1, Cout_p), lambda i, k: (0, 0)),
            ],
            # Output block constant across k -> accumulator tile stays resident.
            out_specs=pl.BlockSpec((tm, Cout_p), lambda i, k: (i, 0)),
            scratch_shapes=[pltpu.VMEM((tm, Cout_p), jnp.float32)],
        ),
        compiler_params=pltpu.CompilerParams(
            dimension_semantics=("parallel", "arbitrary"),
            vmem_limit_bytes=vmem_limit_bytes,
        ),
    )(x2d, w1_p, b1_p, w2_p, b2_p)

    return out2d[:M, :Cout].reshape(B, N, Cout)


def mlp_reference(x, w1, b1, w2, b2):
    h = jnp.einsum("bnc,ch->bnh", x, w1) + b1
    h = _gelu_exact(h)
    o = jnp.einsum("bnh,ho->bno", h, w2) + b2
    return o


if __name__ == "__main__":
    # Small shapes consistent with the module's forward on transformer tokens.
    B, N = 2, 8
    in_features = 32
    hidden_features = 64
    out_features = 32

    key = jax.random.PRNGKey(0)
    kx, k1, kb1, k2, kb2 = jax.random.split(key, 5)

    x = jax.random.normal(kx, (B, N, in_features), dtype=jnp.float32)

    # Deterministic parameter init (shapes match nn.Linear, stored transposed).
    bound1 = 1.0 / math.sqrt(in_features)
    w1 = jax.random.uniform(k1, (in_features, hidden_features),
                            minval=-bound1, maxval=bound1, dtype=jnp.float32)
    b1 = jax.random.uniform(kb1, (hidden_features,),
                            minval=-bound1, maxval=bound1, dtype=jnp.float32)
    bound2 = 1.0 / math.sqrt(hidden_features)
    w2 = jax.random.uniform(k2, (hidden_features, out_features),
                            minval=-bound2, maxval=bound2, dtype=jnp.float32)
    b2 = jax.random.uniform(kb2, (out_features,),
                            minval=-bound2, maxval=bound2, dtype=jnp.float32)

    out = mlp_pallas(x, w1, b1, w2, b2)
    out = jax.block_until_ready(out)

    ref = mlp_reference(x, w1, b1, w2, b2)
    assert out.shape == (B, N, out_features)
    assert jnp.allclose(out, ref, atol=1e-5, rtol=1e-5)

    print("KERNEL_OK")
</pallas_src>

<mosaic_0001>
module attributes {stable_mosaic.version = 11 : i64} {
  func.func @mlp_kernel(%arg0: i32, %arg1: i32, %arg2: memref<16x128xf32, #tpu.memory_space<vmem>>, %arg3: memref<128x128xf32, #tpu.memory_space<vmem>>, %arg4: memref<1x128xf32, #tpu.memory_space<vmem>>, %arg5: memref<128x128xf32, #tpu.memory_space<vmem>>, %arg6: memref<1x128xf32, #tpu.memory_space<vmem>>, %arg7: memref<16x128xf32, #tpu.memory_space<vmem>>, %arg8: memref<16x128xf32, #tpu.memory_space<vmem>>) attributes {dimension_semantics = [#tpu.dimension_semantics<parallel>, #tpu.dimension_semantics<arbitrary>], iteration_bounds = array<i64: 1, 1>, scalar_prefetch = 0 : i64, scratch_operands = 1 : i64, tpu.core_type = #tpu.core_type<tc>, window_params = [{transform_indices = @transform_0, window_bounds = array<i64: 16, 128>}, {transform_indices = @transform_1, window_bounds = array<i64: 128, 128>}, {transform_indices = @transform_2, window_bounds = array<i64: 1, 128>}, {transform_indices = @transform_3, window_bounds = array<i64: 128, 128>}, {pipeline_mode = #tpu.pipeline_mode<synchronous>, transform_indices = @transform_4, window_bounds = array<i64: 1, 128>}, {transform_indices = @transform_5, window_bounds = array<i64: 16, 128>}]} {
    %c0_i32 = arith.constant 0 : i32
    %0 = arith.cmpi eq, %arg1, %c0_i32 : i32
    %1 = arith.extui %0 : i1 to i32
    %c0_i32_0 = arith.constant 0 : i32
    %2 = arith.cmpi ne, %1, %c0_i32_0 : i32
    scf.if %2 {
      %cst_18 = arith.constant 0.000000e+00 : f32
      %26 = vector.broadcast %cst_18 : f32 to vector<16x128xf32>
      %c0_19 = arith.constant 0 : index
      %c0_20 = arith.constant 0 : index
      %27 = vector.load %arg8[%c0_19, %c0_20] : memref<16x128xf32, #tpu.memory_space<vmem>>, vector<16x128xf32>
      tpu.vector_store %arg8[%c0_19, %c0_20], %26 {strides = array<i32>} : memref<16x128xf32, #tpu.memory_space<vmem>>, vector<16x128xf32>,
    } else {
    }
    %c0 = arith.constant 0 : index
    %c0_1 = arith.constant 0 : index
    %3 = vector.load %arg2[%c0, %c0_1] : memref<16x128xf32, #tpu.memory_space<vmem>>, vector<16x128xf32>
    %c0_2 = arith.constant 0 : index
    %c0_3 = arith.constant 0 : index
    %4 = vector.load %arg3[%c0_2, %c0_3] : memref<128x128xf32, #tpu.memory_space<vmem>>, vector<128x128xf32>
    %cst = arith.constant dense<0.000000e+00> : vector<16x128xf32>
    %5 = tpu.matmul %3, %4, %cst {dimension_numbers = #tpu.dot_dimension_numbers<[1], [0], [0], [1], [0, 0, 1, 1], [], []>} : vector<16x128xf32>, vector<128x128xf32>, vector<16x128xf32> -> vector<16x128xf32>
    %c0_4 = arith.constant 0 : index
    %c0_5 = arith.constant 0 : index
    %6 = vector.load %arg4[%c0_4, %c0_5] : memref<1x128xf32, #tpu.memory_space<vmem>>, vector<1x128xf32>
    %7 = vector.broadcast %6 : vector<1x128xf32> to vector<16x128xf32>
    %8 = arith.addf %5, %7 : vector<16x128xf32>
    %cst_6 = arith.constant 5.000000e-01 : f32
    %9 = vector.broadcast %cst_6 : f32 to vector<16x128xf32>
    %10 = arith.mulf %9, %8 : vector<16x128xf32>
    %cst_7 = arith.constant 2.000000e+00 : f32
    %11 = math.sqrt %cst_7 : f32
    %12 = vector.broadcast %11 : f32 to vector<16x128xf32>
    %13 = arith.divf %8, %12 : vector<16x128xf32>
    %14 = math.erf %13 : vector<16x128xf32>
    %cst_8 = arith.constant 1.000000e+00 : f32
    %15 = vector.broadcast %cst_8 : f32 to vector<16x128xf32>
    %16 = arith.addf %15, %14 : vector<16x128xf32>
    %17 = arith.mulf %10, %16 : vector<16x128xf32>
    %c0_9 = arith.constant 0 : index
    %c0_10 = arith.constant 0 : index
    %18 = vector.load %arg8[%c0_9, %c0_10] : memref<16x128xf32, #tpu.memory_space<vmem>>, vector<16x128xf32>
    %c0_11 = arith.constant 0 : index
    %c0_12 = arith.constant 0 : index
    %19 = vector.load %arg5[%c0_11, %c0_12] : memref<128x128xf32, #tpu.memory_space<vmem>>, vector<128x128xf32>
    %cst_13 = arith.constant dense<0.000000e+00> : vector<16x128xf32>
    %20 = tpu.matmul %17, %19, %cst_13 {dimension_numbers = #tpu.dot_dimension_numbers<[1], [0], [0], [1], [0, 0, 1, 1], [], []>} : vector<16x128xf32>, vector<128x128xf32>, vector<16x128xf32> -> vector<16x128xf32>
    %21 = arith.addf %18, %20 : vector<16x128xf32>
    %c0_14 = arith.constant 0 : index
    %c0_15 = arith.constant 0 : index
    %22 = vector.load %arg8[%c0_14, %c0_15] : memref<16x128xf32, #tpu.memory_space<vmem>>, vector<16x128xf32>
    tpu.vector_store %arg8[%c0_14, %c0_15], %21 {strides = array<i32>} : memref<16x128xf32, #tpu.memory_space<vmem>>, vector<16x128xf32>,
    %c0_i32_16 = arith.constant 0 : i32
    %23 = arith.cmpi eq, %arg1, %c0_i32_16 : i32
    %24 = arith.extui %23 : i1 to i32
    %c0_i32_17 = arith.constant 0 : i32
    %25 = arith.cmpi ne, %24, %c0_i32_17 : i32
    scf.if %25 {
      %c0_18 = arith.constant 0 : index
      %c0_19 = arith.constant 0 : index
      %26 = vector.load %arg8[%c0_18, %c0_19] : memref<16x128xf32, #tpu.memory_space<vmem>>, vector<16x128xf32>
      %c0_20 = arith.constant 0 : index
      %c0_21 = arith.constant 0 : index
      %27 = vector.load %arg6[%c0_20, %c0_21] : memref<1x128xf32, #tpu.memory_space<vmem>>, vector<1x128xf32>
      %28 = vector.broadcast %27 : vector<1x128xf32> to vector<16x128xf32>
      %29 = arith.addf %26, %28 : vector<16x128xf32>
      %c0_22 = arith.constant 0 : index
      %c0_23 = arith.constant 0 : index
      %30 = vector.load %arg7[%c0_22, %c0_23] : memref<16x128xf32, #tpu.memory_space<vmem>>, vector<16x128xf32>
      tpu.vector_store %arg7[%c0_22, %c0_23], %29 {strides = array<i32>} : memref<16x128xf32, #tpu.memory_space<vmem>>, vector<16x128xf32>,
    } else {
    }
    return
  }
  func.func @transform_0(%arg0: i32, %arg1: i32) -> (i32, i32) {
    %c0_i32 = arith.constant 0 : i32
    %c0_i32_0 = arith.constant 0 : i32
    return %arg0, %c0_i32 : i32, i32
  }
  func.func @transform_1(%arg0: i32, %arg1: i32) -> (i32, i32) {
    %c0_i32 = arith.constant 0 : i32
    %c0_i32_0 = arith.constant 0 : i32
    return %c0_i32, %arg1 : i32, i32
  }
  func.func @transform_2(%arg0: i32, %arg1: i32) -> (i32, i32) {
    %c0_i32 = arith.constant 0 : i32
    %c0_i32_0 = arith.constant 0 : i32
    return %c0_i32, %arg1 : i32, i32
  }
  func.func @transform_3(%arg0: i32, %arg1: i32) -> (i32, i32) {
    %c0_i32 = arith.constant 0 : i32
    %c0_i32_0 = arith.constant 0 : i32
    return %arg1, %c0_i32 : i32, i32
  }
  func.func @transform_4(%arg0: i32, %arg1: i32) -> (i32, i32) {
    %c0_i32 = arith.constant 0 : i32
    %c0_i32_0 = arith.constant 0 : i32
    %c0_i32_1 = arith.constant 0 : i32
    return %c0_i32, %c0_i32_0 : i32, i32
  }
  func.func @transform_5(%arg0: i32, %arg1: i32) -> (i32, i32) {
    %c0_i32 = arith.constant 0 : i32
    %c0_i32_0 = arith.constant 0 : i32
    return %arg0, %c0_i32 : i32, i32
  }
}

</mosaic_0001>

<bundles_post_ra>
// kernel: tpu_custom_call.1
= control target key start
LH: loop header
LB: loop body
LE: loop exit
PB: predicated region body
PF: predicated region fallthrough
CT: control target
= control target key end

     0   :  { %10 = vsyncpa [#allocation4], 0  ;;  %s787_s0 = inlined_call_operand.hbm [shape: f32[16,128], index: 0, kind: input, shape index: {}]   ;;  %s788_s1 = inlined_call_operand.hbm [shape: f32[128,128], index: 1, kind: input, shape index: {}]   ;;  %s789_s2 = inlined_call_operand.hbm [shape: f32[1,128], index: 2, kind: input, shape index: {}]   ;;  %s790_s3 = inlined_call_operand.hbm [shape: f32[128,128], index: 3, kind: input, shape index: {}]   ;;  %s791_s4 = inlined_call_operand.hbm [shape: f32[1,128], index: 4, kind: input, shape index: {}]   ;;  %s792_s5 = inlined_call_operand.hbm [shape: f32[16,128], index: 5, kind: output, shape index: {}]  }
   0x1   :  { %11 = vsyncpa [#allocation7], 0 }
   0x2   :  { %12 = vsyncpa [#allocation10], 0 }
   0x3   :  { %13 = vsyncpa [#allocation5], 0  ;;  %s658_s18 = smov [#allocation6]   ;;  %s659_s20 = smov [#allocation9]  }
   0x4   :  { %s31_s19 = sshll.u32 %s658_s18, 4  ;;  %s53_s21 = sshll.u32 %s659_s20, 4  ;;  %s32_s19 = int_to_ptr.vmem [resolvable:$true] %s31_s19  ;;  %s696_s21 = int_to_ptr.vmem [resolvable:$true] %s53_s21 }
   0x5   :  { %s518_s24 = scalar_lea.hbm %s788_s1, 2048 }
   0x6   :  { %p519_p0 = scmp.ne.s32.totalorder %s788_s1, %s518_s24  ;;  %p522_p1 = scmp.lt.u32.totalorder %s518_s24, %s788_s1 }
   0x8   :  { %p524_p2 = pnand %p522_p1, %p519_p0 }
   0xa   :  { %527 = shalt.err (!%p524_p2)
}
   0xb   :  { %s528_s29 = scalar_lea.vmem %s32_s19, 2048  ;;  %p533_p4 = scmp.lt.s32.totalorder %s32_s19, %s32_s19 }
   0xc   :  { %p529_p3 = scmp.ne.s32.totalorder %s32_s19, %s528_s29  ;;  %p534_p5 = scmp.lt.s32.totalorder %s528_s29, %s528_s29 }
   0xe   :  { %p535_p6 = por %p534_p5, %p533_p4 }
  0x10   :  { %p536_p7 = pnand %p535_p6, %p529_p3 }
  0x12   :  { %539 = shalt.err (!%p536_p7)
}
  0x13   :  { %s660_s30 = smov 128   ;;  %s661_s6 = smov 8  }
  0x14   :  { %37 = dma.hbm_to_vmem [thread:$0]  %s788_s1, 2048, %s32_s19, [#allocation7], %s660_s30, %s660_s30, %s661_s6  }
  0x15   :  { %s540_s11 = scalar_lea.hbm %s790_s3, 2048 }
  0x16   :  { %p541_p8 = scmp.ne.s32.totalorder %s790_s3, %s540_s11  ;;  %p544_p9 = scmp.lt.u32.totalorder %s540_s11, %s790_s3 }
  0x18   :  { %p546_p10 = pnand %p544_p9, %p541_p8 }
  0x1a   :  { %549 = shalt.err (!%p546_p10)
}
  0x1b   :  { %s550_s16 = scalar_lea.vmem %s696_s21, 2048  ;;  %p555_p12 = scmp.lt.s32.totalorder %s696_s21, %s696_s21 }
  0x1c   :  { %p551_p11 = scmp.ne.s32.totalorder %s696_s21, %s550_s16  ;;  %p556_p13 = scmp.lt.s32.totalorder %s550_s16, %s550_s16 }
  0x1e   :  { %p557_p0 = por %p556_p13, %p555_p12 }
  0x20   :  { %p558_p1 = pnand %p557_p0, %p551_p11 }
  0x22   :  { %561 = shalt.err (!%p558_p1)
}
  0x23   :  { %59 = dma.hbm_to_vmem [thread:$0]  %s790_s3, 2048, %s696_s21, [#allocation10], %s660_s30, %s660_s30, %s661_s6  }
  0x24   :  { %s662_s18 = smov [#allocation3]   ;;  %s663_s20 = smov [#allocation8]  }
  0x25   :  { %s19_s19 = sshll.u32 %s662_s18, 4  ;;  %s44_s22 = sshll.u32 %s663_s20, 4  ;;  %s20_s19 = int_to_ptr.vmem [resolvable:$true] %s19_s19  ;;  %s45_s22 = int_to_ptr.vmem [resolvable:$true] %s44_s22 }
  0x26   :  { %s562_s25 = scalar_lea.hbm %s787_s0, 256 }
  0x27   :  { %p563_p2 = scmp.ne.s32.totalorder %s787_s0, %s562_s25  ;;  %p566_p3 = scmp.lt.u32.totalorder %s562_s25, %s787_s0 }
  0x29   :  { %p568_p4 = pnand %p566_p3, %p563_p2 }
  0x2b   :  { %571 = shalt.err (!%p568_p4)
}
  0x2c   :  { %s572_s3 = scalar_lea.vmem %s20_s19, 256  ;;  %p577_p6 = scmp.lt.s32.totalorder %s20_s19, %s20_s19 }
  0x2d   :  { %p573_p5 = scmp.ne.s32.totalorder %s20_s19, %s572_s3  ;;  %p578_p7 = scmp.lt.s32.totalorder %s572_s3, %s572_s3 }
  0x2f   :  { %p579_p8 = por %p578_p7, %p577_p6 }
  0x31   :  { %p580_p9 = pnand %p579_p8, %p573_p5 }
  0x33   :  { %583 = shalt.err (!%p580_p9)
}
  0x34   :  { %25 = dma.hbm_to_vmem [thread:$0]  %s787_s0, 256, %s20_s19, [#allocation4], %s660_s30, %s660_s30, %s661_s6  }
  0x35   :  { %s584_s10 = scalar_lea.hbm %s789_s2, 16 }
  0x36   :  { %p585_p10 = scmp.ne.s32.totalorder %s789_s2, %s584_s10  ;;  %p588_p11 = scmp.lt.u32.totalorder %s584_s10, %s789_s2 }
  0x38   :  { %p590_p12 = pnand %p588_p11, %p585_p10 }
  0x3a   :  { %593 = shalt.err (!%p590_p12)
}
  0x3b   :  { %s594_s15 = scalar_lea.vmem %s45_s22, 16  ;;  %s598_s16 = scalar_lea.vmem %s45_s22, 32 }
  0x3c   :  { %p595_p13 = scmp.ne.s32.totalorder %s45_s22, %s594_s15  ;;  %p599_p0 = scmp.lt.s32.totalorder %s45_s22, %s45_s22 }
  0x3d   :  { %p600_p1 = scmp.lt.s32.totalorder %s598_s16, %s594_s15 }
  0x3f   :  { %p601_p2 = por %p600_p1, %p599_p0 }
  0x41   :  { %p602_p3 = pnand %p601_p2, %p595_p13 }
  0x43   :  { %605 = shalt.err (!%p602_p3)
}
  0x44   :  { %47 = dma.hbm_to_vmem [thread:$0]  %s789_s2, 16, %s45_s22, [#allocation7]  }
  0x45   :  { %s664_s17 = smov [#allocation11]   ;;  %s606_s23 = scalar_lea.hbm %s791_s4, 16 }
  0x46   :  { %s66_s18 = sshll.u32 %s664_s17, 4  ;;  %p607_p4 = scmp.ne.s32.totalorder %s791_s4, %s606_s23  ;;  %s67_s18 = int_to_ptr.vmem [resolvable:$true] %s66_s18 }
  0x47   :  { %p610_p5 = scmp.lt.u32.totalorder %s606_s23, %s791_s4 }
  0x49   :  { %p612_p6 = pnand %p610_p5, %p607_p4 }
  0x4b   :  { %615 = shalt.err (!%p612_p6)
}
  0x4c   :  { %s616_s28 = scalar_lea.vmem %s67_s18, 16  ;;  %s620_s2 = scalar_lea.vmem %s67_s18, 32 }
  0x4d   :  { %p617_p7 = scmp.ne.s32.totalorder %s67_s18, %s616_s28  ;;  %p621_p8 = scmp.lt.s32.totalorder %s67_s18, %s67_s18 }
  0x4e   :  { %p622_p9 = scmp.lt.s32.totalorder %s620_s2, %s616_s28 }
  0x50   :  { %p623_p10 = por %p622_p9, %p621_p8 }
  0x52   :  { %p624_p11 = pnand %p623_p10, %p617_p7 }
  0x54   :  { %627 = shalt.err (!%p624_p11)
}
  0x55   :  { %69 = dma.hbm_to_vmem [thread:$0]  %s791_s4, 16, %s67_s18, [#allocation10]  }
  0x56   :  { %650 = dma.done.wait [#allocation4], 256  }
  0x57   :  { %651 = vsyncadd [#allocation4], 4294967040 }
  0x58   :  { %652 = dma.done.wait [#allocation7], 2064  }
  0x59   :  { %653 = vsyncadd [#allocation7], 4294965232 }
  0x5a   :  { %654 = dma.done.wait [#allocation10], 2064  }
  0x5b   :  { %655 = vsyncadd [#allocation10], 4294965232  ;;  %v93_v0 = vld [vmem:[#allocation6] sm:$0xff]  ;;  %v94_v1 = vld [vmem:[#allocation6 + $0x8] sm:$0xff]  ;;  %s665_s4 = smov [#allocation12]  }
  0x5c   :  { %v95_v2 = vld [vmem:[#allocation6 + $0x10] sm:$0xff]  ;;  %v442_v3 = vpack.c.bf16 %v94_v1, %v93_v0  ;;  %v96_v4 = vld [vmem:[#allocation6 + $0x18] sm:$0xff]  ;;  %v97_v6 = vld [vmem:[#allocation6 + $0x20] sm:$0xff]  ;;  %s320_s3 = sshll.u32 %s665_s4, 4  ;;  %s321_s3 = int_to_ptr.vmem [resolvable:$true] %s320_s3 }
  0x5d   :  { %v446_v5 = vpack.c.bf16 %v96_v4, %v95_v2  ;;  %v98_v7 = vld [vmem:[#allocation6 + $0x28] sm:$0xff]  ;;  %v99_v9 = vld [vmem:[#allocation6 + $0x30] sm:$0xff]  ;;  %v100_v10 = vld [vmem:[#allocation6 + $0x38] sm:$0xff]  ;;  %s628_s21 = scalar_lea.vmem %s321_s3, 256  ;;  %p633_p13 = scmp.lt.s32.totalorder %s321_s3, %s321_s3 }
  0x5e   :  { %443 = vmatprep.subr.bf16.mxu0 %v442_v3  ;;  %v450_v8 = vpack.c.bf16 %v98_v7, %v97_v6  ;;  %v91_v11 = vld [vmem:[#allocation3] sm:$0xff]  ;;  %v204_v12 = vld [vmem:[#allocation9] sm:$0xff]  ;;  %v207_v16 = vld [vmem:[#allocation9 + $0x18] sm:$0xff]  ;;  %v454_v20 = vpack.c.bf16 %v100_v10, %v99_v9  ;;  %p629_p12 = scmp.ne.s32.totalorder %s321_s3, %s628_s21  ;;  %p634_p0 = scmp.lt.s32.totalorder %s628_s21, %s628_s21 }
  0x5f   :  { %445 = vmatpush3.bf16.msra.mxu0 %v442_v3  ;;  %404 = vmatprep.mubr.f32.mxu0 %v91_v11  ;;  %v205_v13 = vld [vmem:[#allocation9 + $0x8] sm:$0xff]  ;;  %v206_v14 = vld [vmem:[#allocation9 + $0x10] sm:$0xff]  ;;  %v208_v18 = vld [vmem:[#allocation9 + $0x20] sm:$0xff] }
  0x60   :  { %447 = vmatprep.subr.bf16.mxu0 %v446_v5  ;;  %v474_v15 = vpack.c.bf16 %v205_v13, %v204_v12  ;;  %v478_v17 = vpack.c.bf16 %v207_v16, %v206_v14  ;;  %v209_v19 = vld [vmem:[#allocation9 + $0x28] sm:$0xff]  ;;  %v101_v21 = vld [vmem:[#allocation6 + $0x40] sm:$0xff]  ;;  %v104_v26 = vld [vmem:[#allocation6 + $0x58] sm:$0xff]  ;;  %p635_p1 = por %p634_p0, %p633_p13 }
  0x61   :  { %v102_v22 = vld [vmem:[#allocation6 + $0x48] sm:$0xff]  ;;  %v482_v23 = vpack.c.bf16 %v209_v19, %v208_v18  ;;  %v103_v25 = vld [vmem:[#allocation6 + $0x50] sm:$0xff]  ;;  %v105_v28 = vld [vmem:[#allocation6 + $0x60] sm:$0xff] }
  0x62   :  { %475 = vmatprep.subr.bf16.mxu1 %v474_v15  ;;  %v458_v24 = vpack.c.bf16 %v102_v22, %v101_v21  ;;  %v462_v27 = vpack.c.bf16 %v104_v26, %v103_v25  ;;  %v106_v29 = vld [vmem:[#allocation6 + $0x68] sm:$0xff]  ;;  %v107_v31 = vld [vmem:[#allocation6 + $0x70] sm:$0xff]  ;;  %v108_v32 = vld [vmem:[#allocation6 + $0x78] sm:$0xff]  ;;  %p636_p2 = pnand %p635_p1, %p629_p12 }
  0x63   :  { %449 = vmatpush3.bf16.msra.mxu0 %v446_v5  ;;  %477 = vmatpush3.bf16.msra.mxu1 %v474_v15  ;;  %v466_v30 = vpack.c.bf16 %v106_v29, %v105_v28  ;;  %v470_v33 = vpack.c.bf16 %v108_v32, %v107_v31  ;;  %v92_v34 = vld [vmem:[#allocation3 + $0x8] sm:$0xff]  ;;  %v212_v38 = vld [vmem:[#allocation9 + $0x40] sm:$0xff]  ;;  %v213_v39 = vld [vmem:[#allocation9 + $0x48] sm:$0xff] }
  0x64   :  { %451 = vmatprep.subr.bf16.mxu0 %v450_v8  ;;  %479 = vmatprep.subr.bf16.mxu1 %v478_v17  ;;  %v210_v35 = vld [vmem:[#allocation9 + $0x30] sm:$0xff]  ;;  %v211_v36 = vld [vmem:[#allocation9 + $0x38] sm:$0xff]  ;;  %v490_v40 = vpack.c.bf16 %v213_v39, %v212_v38  ;;  %v216_v44 = vld [vmem:[#allocation9 + $0x60] sm:$0xff] }
  0x65   :  { %v486_v37 = vpack.c.bf16 %v211_v36, %v210_v35  ;;  %v214_v41 = vld [vmem:[#allocation9 + $0x50] sm:$0xff]  ;;  %v215_v42 = vld [vmem:[#allocation9 + $0x58] sm:$0xff]  ;;  %v217_v45 = vld [vmem:[#allocation9 + $0x68] sm:$0xff] }
  0x66   :  { %v494_v43 = vpack.c.bf16 %v215_v42, %v214_v41  ;;  %v498_v46 = vpack.c.bf16 %v217_v45, %v216_v44  ;;  %v218_v47 = vld [vmem:[#allocation9 + $0x70] sm:$0xff]  ;;  %v219_v48 = vld [vmem:[#allocation9 + $0x78] sm:$0xff]  ;;  %v335_v1 = vld [vmem:[#allocation11] ss:$0 sm:$0xff] }
  0x67   :  { %453 = vmatpush3.bf16.msra.mxu0 %v450_v8  ;;  %481 = vmatpush3.bf16.msra.mxu1 %v478_v17  ;;  %v502_v49 = vpack.c.bf16 %v219_v48, %v218_v47  ;;  %v334_v50 = vld [vmem:[#allocation8] ss:$0 sm:$0xff] }
  0x68   :  { %455 = vmatprep.subr.bf16.mxu0 %v454_v20  ;;  %483 = vmatprep.subr.bf16.mxu1 %v482_v23 }
  0x6b   :  { %457 = vmatpush3.bf16.msra.mxu0 %v454_v20  ;;  %485 = vmatpush3.bf16.msra.mxu1 %v482_v23 }
  0x6c   :  { %459 = vmatprep.subr.bf16.mxu0 %v458_v24  ;;  %487 = vmatprep.subr.bf16.mxu1 %v486_v37 }
  0x6f   :  { %461 = vmatpush3.bf16.msra.mxu0 %v458_v24  ;;  %489 = vmatpush3.bf16.msra.mxu1 %v486_v37 }
  0x70   :  { %463 = vmatprep.subr.bf16.mxu0 %v462_v27  ;;  %491 = vmatprep.subr.bf16.mxu1 %v490_v40 }
  0x73   :  { %465 = vmatpush3.bf16.msra.mxu0 %v462_v27  ;;  %493 = vmatpush3.bf16.msra.mxu1 %v490_v40 }
  0x74   :  { %467 = vmatprep.subr.bf16.mxu0 %v466_v30  ;;  %495 = vmatprep.subr.bf16.mxu1 %v494_v43 }
  0x77   :  { %469 = vmatpush3.bf16.msra.mxu0 %v466_v30  ;;  %497 = vmatpush3.bf16.msra.mxu1 %v494_v43 }
  0x78   :  { %471 = vmatprep.subr.bf16.mxu0 %v470_v33  ;;  %499 = vmatprep.subr.bf16.mxu1 %v498_v46 }
  0x7b   :  { %473 = vmatpush3.bf16.msra.mxu0 %v470_v33  ;;  %501 = vmatpush3.bf16.msra.mxu1 %v498_v46 }
  0x7c   :  { %503 = vmatprep.subr.bf16.mxu1 %v502_v49 }
  0x7e   :  { %405 = vmatmul.mubr.f32.vlgmr.msra.gmra.mrb[0].mxu0 %v92_v34 }
  0x7f   :  { %505 = vmatpush3.bf16.msra.mxu1 %v502_v49 }
 0x151   :  { %v406_v51 = vpop.f32.mrb[0].mxu0 }
 0x152   :  { %v188_v52 = vadd.f32 %v406_v51, %v334_v50  ;;  %v182_v53 = vpop.f32.mrb[1].mxu0 }
 0x153   :  { %v183_v54 = vadd.f32 %v334_v50, %v182_v53 }
 0x154   :  { %v195_v55 = vmul.f32 0.70710677, %v188_v52  ;;  %v192_v62 = vmul.f32 0.5, %v188_v52 }
 0x155   :  { %v194_v56 = vmul.f32 0.70710677, %v183_v54  ;;  %v191_v60 = vmul.f32 0.5, %v183_v54 }
 0x156   :  { %514 = verf.f32 %v195_v55 }
 0x157   :  { %516 = verf.f32 %v194_v56 }
 0x160   :  { %v515_v57 = vpop.eup %514 }
 0x161   :  { %v517_v58 = vpop.eup %516  ;;  %v199_v59 = vadd.f32 1.0, %v515_v57 }
 0x162   :  { %v198_v61 = vadd.f32 1.0, %v517_v58 }
 0x163   :  { %v201_v0 = vmul.f32 %v199_v59, %v192_v62 }
 0x164   :  { %v200_v63 = vmul.f32 %v198_v61, %v191_v60 }
 0x166   :  { %439 = vmatprep.mubr.f32.mxu1 %v200_v63 }
 0x167   :  { %440 = vmatmul.mubr.f32.vlgmr.msra.gmra.mrb[0].mxu1 %v201_v0 }
 0x23a   :  { %v441_v2 = vpop.f32.mrb[0].mxu1 }
 0x23b   :  { %v312_v3 = vadd.f32 %v441_v2, %v335_v1  ;;  %v286_v4 = vpop.f32.mrb[1].mxu1 }
 0x23c   :  { %v311_v5 = vadd.f32 %v335_v1, %v286_v4 }
 0x23d   :  { %314 = vst [vmem:[#allocation12 + $0x8] sm:$0xff] %v312_v3 }
 0x23e   :  { %313 = vst [vmem:[#allocation12] sm:$0xff] %v311_v5 }
 0x23f   :  { %639 = shalt.err (!%p636_p2)
}
 0x240   :  { %s640_s9 = scalar_lea.hbm %s792_s5, 256 }
 0x241   :  { %p641_p3 = scmp.ne.s32.totalorder %s792_s5, %s640_s9  ;;  %p644_p4 = scmp.lt.u32.totalorder %s640_s9, %s792_s5 }
 0x243   :  { %p646_p5 = pnand %p644_p4, %p641_p3 }
 0x245   :  { %649 = shalt.err (!%p646_p5)
}
 0x246   :  { %326 = dma.vmem_to_hbm [thread:$0]  %s321_s3, 256, %s792_s5, [#allocation5], %s660_s30, %s660_s30, %s661_s6  }
 0x247   :  { %656 = dma.done.wait [#allocation5], 256  }
 0x248   :  { %657 = vsyncadd [#allocation5], 4294967040 }
 0x249   :  { %330 = vsyncpa [#allocation4], 1 }
 0x24a   :  { %331 = vsyncpa [#allocation7], 1 }
 0x24b   :  { %332 = vsyncpa [#allocation10], 1 }
 0x24c   :  { %333 = vsyncpa [#allocation5], 1 }

</bundles_post_ra>
